<compile_context>
chip_gen: v5e
topology: v5e:2x2
jax: 0.10.0
libtpu: 0.0.40
codegen_flags: <defaults>
</compile_context>

<pallas_src>
import jax
import jax.numpy as jnp
from jax import lax
from jax.experimental import pallas as pl
from jax.experimental.pallas import tpu as pltpu


def simple_cnn_kernel(x_ref, w1_ref, b1_ref, w2_ref, b2_ref, w3_ref, b3_ref,
                      o_ref):
    # x_ref:  (TB, C_in)   f32, natural batch-major layout straight from HBM
    # w1_ref: (MD, C_in)   f32 conv1d(kernel_size=1) weight
    # b1_ref: (MD, 1)      epilogue dtype
    # w2_ref: (H_P, MD)    MXU (compute) dtype, rows zero-padded 50 -> 56
    # b2_ref: (H_P, 1)     epilogue dtype
    # w3_ref: (1, H_P)     compute dtype, fc2 weight as a lane-dense row
    # b3_ref: (1, 1)       f32 scalar in SMEM
    # o_ref:  (1, TB)      f32, lane-dense output (batch on lanes)
    mxu_dtype = w2_ref.dtype
    ep_dtype = b1_ref.dtype

    # conv1d(k=1) + ReLU  ==  relu(W1 @ x^T + b1).  Contract the channel dim
    # of both operands (no materialized transpose of x anywhere); result is
    # (MD, TB) with batch on lanes.  f32 operands, f32 accumulate.
    h1 = lax.dot_general(w1_ref[...], x_ref[...],
                         dimension_numbers=(((1,), (1,)), ((), ())),
                         preferred_element_type=jnp.float32)       # (MD, TB)
    h1 = jnp.maximum(h1.astype(ep_dtype) + b1_ref[...], 0.0)

    # fc1 + ReLU (MXU in compute dtype, f32 accumulate, epilogue in ep_dtype).
    h2 = jnp.dot(w2_ref[...], h1.astype(mxu_dtype),
                 preferred_element_type=jnp.float32)               # (H_P, TB)
    h2 = jnp.maximum(h2.astype(ep_dtype) + b2_ref[...], 0.0)

    # fc2 as a 1-row MXU matmul (frees the VPU/XLU; output stays lane-dense).
    # Padded hidden rows of h2 / w3 are zero, so they contribute nothing.
    out = jnp.dot(w3_ref[...], h2.astype(mxu_dtype),
                  preferred_element_type=jnp.float32)              # (1, TB)
    o_ref[...] = (out + b3_ref[0, 0]).astype(o_ref.dtype)


def _round_up(x, m):
    return ((x + m - 1) // m) * m


def _cdiv(a, b):
    return (a + b - 1) // b


def simple_cnn_forward(x_ncl, params, *, compute_dtype=jnp.bfloat16,
                       epilogue_dtype=None, tb_max=4096, min_grid_steps=1):
    """Fused SimpleCNN forward.

    x_ncl:          (B, input_len, 1) float32 (PyTorch NCL layout).
    compute_dtype:  MXU operand dtype for fc1/fc2 (bf16 default; float32 gives
                    a bit-faithful path).
    epilogue_dtype: dtype of bias+ReLU elementwise work; defaults to
                    compute_dtype (good on v6e/v7x bf16 VPU).  Pass
                    jnp.float32 on v5e (no bf16 VPU).
    min_grid_steps: set to 2 (or an even number) on v7x so the "parallel"
                    batch axis can be sharded across both TensorCores.
    """
    if epilogue_dtype is None:
        epilogue_dtype = compute_dtype

    w1, b1, w2, b2, w3, b3 = params
    B, C, L = x_ncl.shape
    assert L == 1, "SimpleCNN forward requires spatial length 1 (flatten -> fc1)"
    model_dim = w1.shape[0]
    hidden = w2.shape[0]
    assert w3.shape == (1, hidden)

    # Feature dims: model_dim (64) needs no padding; hidden only 50 -> 56.
    MD = model_dim
    H_P = _round_up(hidden, 8)

    # Batch tiling: minimize last-tile padding, allow forcing >=2 grid steps.
    tb_max = _round_up(tb_max, 128)
    n_steps = max(_cdiv(max(B, 1), tb_max), max(min_grid_steps, 1))
    TB = _round_up(_cdiv(max(B, 1), n_steps), 128)
    B_pad = n_steps * TB

    # x stays in natural (B, C) layout and f32: no transpose, no cast pass.
    # Only a zero-pad of the batch rows when B isn't tile-aligned.
    x2 = x_ncl.reshape(B, C)
    if B_pad != B:
        x2 = jnp.pad(x2, ((0, B_pad - B), (0, 0)))

    # Weights: w1 stays f32 (first matmul in f32; K=16 is negligible and x
    # avoids any cast).  fc1/fc2 weights in compute dtype, biases in epilogue
    # dtype, hidden dim zero-padded to H_P.
    w1m = w1[:, :, 0].astype(jnp.float32)                       # (MD, C)
    b1c = b1.reshape(MD, 1).astype(epilogue_dtype)              # (MD, 1)
    w2p = jnp.zeros((H_P, MD), compute_dtype).at[:hidden, :].set(
        w2.astype(compute_dtype))                               # (H_P, MD)
    b2p = jnp.zeros((H_P, 1), epilogue_dtype).at[:hidden, 0].set(
        b2.astype(epilogue_dtype))                              # (H_P, 1)
    w3p = jnp.zeros((1, H_P), compute_dtype).at[0, :hidden].set(
        w3[0, :].astype(compute_dtype))                         # (1, H_P)
    b3s = b3.reshape(1, 1).astype(jnp.float32)                  # SMEM scalar

    resident = lambda shape: pl.BlockSpec(shape, lambda i: (0, 0))

    out = pl.pallas_call(
        simple_cnn_kernel,
        out_shape=jax.ShapeDtypeStruct((1, B_pad), jnp.float32),
        grid=(n_steps,),
        in_specs=[
            pl.BlockSpec((TB, C), lambda i: (i, 0)),            # x batch tile
            resident((MD, C)),                                  # w1 (resident)
            resident((MD, 1)),                                  # b1
            resident((H_P, MD)),                                # w2
            resident((H_P, 1)),                                 # b2
            resident((1, H_P)),                                 # w3 row
            pl.BlockSpec(memory_space=pltpu.MemorySpace.SMEM),  # b3 scalar
        ],
        out_specs=pl.BlockSpec((1, TB), lambda i: (0, i)),
        compiler_params=pltpu.CompilerParams(
            dimension_semantics=("parallel",),
        ),
    )(x2, w1m, b1c, w2p, b2p, w3p, b3s)

    return out[0, :B].reshape(B, 1)


def init_params(key, input_len, model_dim=64, hidden=50):
    """Deterministic synthetic params matching the PyTorch module's shapes."""
    ks = jax.random.split(key, 6)
    # nn.Conv1d(input_len, model_dim, kernel_size=1): weight (model_dim, input_len, 1)
    w1 = jax.random.normal(ks[0], (model_dim, input_len, 1), jnp.float32) * 0.1
    b1 = jax.random.normal(ks[1], (model_dim,), jnp.float32) * 0.1
    # nn.Linear(model_dim, 50): weight (50, model_dim)
    w2 = jax.random.normal(ks[2], (hidden, model_dim), jnp.float32) * 0.1
    b2 = jax.random.normal(ks[3], (hidden,), jnp.float32) * 0.1
    # nn.Linear(50, 1): weight (1, 50)
    w3 = jax.random.normal(ks[4], (1, hidden), jnp.float32) * 0.1
    b3 = jax.random.normal(ks[5], (1,), jnp.float32) * 0.1
    return (w1, b1, w2, b2, w3, b3)


def reference_forward(x_ncl, params):
    """Plain-JAX reference mirroring the PyTorch forward exactly."""
    w1, b1, w2, b2, w3, b3 = params
    B, C, L = x_ncl.shape
    # Conv1d kernel_size=1: y[b,o,l] = sum_c W[o,c,0]*x[b,c,l] + b[o]
    y = jnp.einsum("bcl,oc->bol", x_ncl, w1[:, :, 0]) + b1[None, :, None]
    y = jnp.maximum(y, 0.0)
    y = y.reshape(B, -1)                        # Flatten (L == 1)
    y = jnp.maximum(y @ w2.T + b2, 0.0)         # fc1 + ReLU
    y = y @ w3.T + b3                           # fc2
    return y


# TODO(synk): training/inference drivers (fit/validate/predict, AdamW, MSELoss,
# DataLoader) are host-side orchestration and are not part of the kernel.

if __name__ == "__main__":
    input_len = 16
    model_dim = 64

    key = jax.random.PRNGKey(0)
    k_x, k_x2, k_p = jax.random.split(key, 3)
    params = init_params(k_p, input_len, model_dim)

    # Case 1: spec-like small batch, full-f32 path (tight accuracy check).
    x_small = jax.random.normal(k_x, (2, input_len, 1), jnp.float32)
    out_f32 = jax.block_until_ready(
        simple_cnn_forward(x_small, params, compute_dtype=jnp.float32))
    ref_small = reference_forward(x_small, params)
    assert out_f32.shape == (2, 1), out_f32.shape
    assert jnp.allclose(out_f32, ref_small, atol=1e-4, rtol=1e-4), (
        out_f32, ref_small)

    # Case 2: non-aligned batch, small tile cap -> multi-step grid + padding;
    # default bf16 MXU/epilogue (f32 accumulate, f32 first matmul).
    x_big = jax.random.normal(k_x2, (300, input_len, 1), jnp.float32)
    out_bf16 = jax.block_until_ready(
        simple_cnn_forward(x_big, params, compute_dtype=jnp.bfloat16,
                           tb_max=256, min_grid_steps=2))
    ref_big = reference_forward(x_big, params)
    assert out_bf16.shape == (300, 1), out_bf16.shape
    assert jnp.allclose(out_bf16, ref_big, atol=3e-2, rtol=3e-2), (
        jnp.max(jnp.abs(out_bf16 - ref_big)))

    print("KERNEL_OK")
</pallas_src>

<mosaic_0001>
module attributes {stable_mosaic.version = 11 : i64} {
  func.func @simple_cnn_kernel(%arg0: i32, %arg1: memref<128x16xf32, #tpu.memory_space<vmem>>, %arg2: memref<64x16xf32, #tpu.memory_space<vmem>>, %arg3: memref<64x1xf32, #tpu.memory_space<vmem>>, %arg4: memref<56x64xf32, #tpu.memory_space<vmem>>, %arg5: memref<56x1xf32, #tpu.memory_space<vmem>>, %arg6: memref<1x56xf32, #tpu.memory_space<vmem>>, %arg7: memref<1x1xf32, #tpu.memory_space<smem>>, %arg8: memref<1x128xf32, #tpu.memory_space<vmem>>) attributes {dimension_semantics = [#tpu.dimension_semantics<parallel>], iteration_bounds = array<i64: 1>, scalar_prefetch = 0 : i64, scratch_operands = 0 : i64, tpu.core_type = #tpu.core_type<tc>, window_params = [{transform_indices = @transform_0, window_bounds = array<i64: 128, 16>}, {pipeline_mode = #tpu.pipeline_mode<synchronous>, transform_indices = @transform_1, window_bounds = array<i64: 64, 16>}, {pipeline_mode = #tpu.pipeline_mode<synchronous>, transform_indices = @transform_2, window_bounds = array<i64: 64, 1>}, {pipeline_mode = #tpu.pipeline_mode<synchronous>, transform_indices = @transform_3, window_bounds = array<i64: 56, 64>}, {pipeline_mode = #tpu.pipeline_mode<synchronous>, transform_indices = @transform_4, window_bounds = array<i64: 56, 1>}, {pipeline_mode = #tpu.pipeline_mode<synchronous>, transform_indices = @transform_5, window_bounds = array<i64: 1, 56>}, {transform_indices = @transform_6, window_bounds = array<i64: 1, 1>}, {transform_indices = @transform_7, window_bounds = array<i64: 1, 128>}]} {
    %c0 = arith.constant 0 : index
    %c0_0 = arith.constant 0 : index
    %0 = vector.load %arg2[%c0, %c0_0] : memref<64x16xf32, #tpu.memory_space<vmem>>, vector<64x16xf32>
    %c0_1 = arith.constant 0 : index
    %c0_2 = arith.constant 0 : index
    %1 = vector.load %arg1[%c0_1, %c0_2] : memref<128x16xf32, #tpu.memory_space<vmem>>, vector<128x16xf32>
    %cst = arith.constant dense<0.000000e+00> : vector<64x128xf32>
    %2 = tpu.matmul %0, %1, %cst {dimension_numbers = #tpu.dot_dimension_numbers<[1], [1], [0], [0], [0, 0, 1, 0], [], []>} : vector<64x16xf32>, vector<128x16xf32>, vector<64x128xf32> -> vector<64x128xf32>
    %c0_3 = arith.constant 0 : index
    %c0_4 = arith.constant 0 : index
    %3 = vector.load %arg3[%c0_3, %c0_4] : memref<64x1xf32, #tpu.memory_space<vmem>>, vector<64x1xf32>
    %4 = vector.broadcast %3 : vector<64x1xf32> to vector<64x128xf32>
    %5 = arith.addf %2, %4 : vector<64x128xf32>
    %cst_5 = arith.constant 0.000000e+00 : f32
    %6 = vector.broadcast %cst_5 : f32 to vector<64x128xf32>
    %7 = arith.maximumf %5, %6 : vector<64x128xf32>
    %c0_6 = arith.constant 0 : index
    %c0_7 = arith.constant 0 : index
    %8 = vector.load %arg4[%c0_6, %c0_7] : memref<56x64xf32, #tpu.memory_space<vmem>>, vector<56x64xf32>
    %cst_8 = arith.constant dense<0.000000e+00> : vector<56x128xf32>
    %9 = tpu.matmul %8, %7, %cst_8 {dimension_numbers = #tpu.dot_dimension_numbers<[1], [0], [0], [1], [0, 0, 1, 1], [], []>} : vector<56x64xf32>, vector<64x128xf32>, vector<56x128xf32> -> vector<56x128xf32>
    %c0_9 = arith.constant 0 : index
    %c0_10 = arith.constant 0 : index
    %10 = vector.load %arg5[%c0_9, %c0_10] : memref<56x1xf32, #tpu.memory_space<vmem>>, vector<56x1xf32>
    %11 = vector.broadcast %10 : vector<56x1xf32> to vector<56x128xf32>
    %12 = arith.addf %9, %11 : vector<56x128xf32>
    %cst_11 = arith.constant 0.000000e+00 : f32
    %13 = vector.broadcast %cst_11 : f32 to vector<56x128xf32>
    %14 = arith.maximumf %12, %13 : vector<56x128xf32>
    %c0_12 = arith.constant 0 : index
    %c0_13 = arith.constant 0 : index
    %15 = vector.load %arg6[%c0_12, %c0_13] : memref<1x56xf32, #tpu.memory_space<vmem>>, vector<1x56xf32>
    %cst_14 = arith.constant dense<0.000000e+00> : vector<1x128xf32>
    %16 = tpu.matmul %15, %14, %cst_14 {dimension_numbers = #tpu.dot_dimension_numbers<[1], [0], [0], [1], [0, 0, 1, 1], [], []>} : vector<1x56xf32>, vector<56x128xf32>, vector<1x128xf32> -> vector<1x128xf32>
    %c0_15 = arith.constant 0 : index
    %c0_16 = arith.constant 0 : index
    %17 = memref.load %arg7[%c0_15, %c0_16] : memref<1x1xf32, #tpu.memory_space<smem>>
    %18 = vector.broadcast %17 : f32 to vector<1x128xf32>
    %19 = arith.addf %16, %18 : vector<1x128xf32>
    %c0_17 = arith.constant 0 : index
    %c0_18 = arith.constant 0 : index
    %20 = vector.load %arg8[%c0_17, %c0_18] : memref<1x128xf32, #tpu.memory_space<vmem>>, vector<1x128xf32>
    tpu.vector_store %arg8[%c0_17, %c0_18], %19 {strides = array<i32>} : memref<1x128xf32, #tpu.memory_space<vmem>>, vector<1x128xf32>,
    return
  }
  func.func @transform_0(%arg0: i32) -> (i32, i32) {
    %c0_i32 = arith.constant 0 : i32
    %c0_i32_0 = arith.constant 0 : i32
    return %arg0, %c0_i32 : i32, i32
  }
  func.func @transform_1(%arg0: i32) -> (i32, i32) {
    %c0_i32 = arith.constant 0 : i32
    %c0_i32_0 = arith.constant 0 : i32
    %c0_i32_1 = arith.constant 0 : i32
    return %c0_i32, %c0_i32_0 : i32, i32
  }
  func.func @transform_2(%arg0: i32) -> (i32, i32) {
    %c0_i32 = arith.constant 0 : i32
    %c0_i32_0 = arith.constant 0 : i32
    %c0_i32_1 = arith.constant 0 : i32
    return %c0_i32, %c0_i32_0 : i32, i32
  }
  func.func @transform_3(%arg0: i32) -> (i32, i32) {
    %c0_i32 = arith.constant 0 : i32
    %c0_i32_0 = arith.constant 0 : i32
    %c0_i32_1 = arith.constant 0 : i32
    return %c0_i32, %c0_i32_0 : i32, i32
  }
  func.func @transform_4(%arg0: i32) -> (i32, i32) {
    %c0_i32 = arith.constant 0 : i32
    %c0_i32_0 = arith.constant 0 : i32
    %c0_i32_1 = arith.constant 0 : i32
    return %c0_i32, %c0_i32_0 : i32, i32
  }
  func.func @transform_5(%arg0: i32) -> (i32, i32) {
    %c0_i32 = arith.constant 0 : i32
    %c0_i32_0 = arith.constant 0 : i32
    %c0_i32_1 = arith.constant 0 : i32
    return %c0_i32, %c0_i32_0 : i32, i32
  }
  func.func @transform_6(%arg0: i32) -> (i32, i32) {
    %c0_i32 = arith.constant 0 : i32
    %c0_i32_0 = arith.constant 0 : i32
    %c0_i32_1 = arith.constant 0 : i32
    return %c0_i32, %c0_i32_0 : i32, i32
  }
  func.func @transform_7(%arg0: i32) -> (i32, i32) {
    %c0_i32 = arith.constant 0 : i32
    %c0_i32_0 = arith.constant 0 : i32
    return %c0_i32, %arg0 : i32, i32
  }
}

</mosaic_0001>

<bundles_post_ra>
// kernel: tpu_custom_call.1
= control target key start
LH: loop header
LB: loop body
LE: loop exit
PB: predicated region body
PF: predicated region fallthrough
CT: control target
= control target key end

     0   :  { %vm100_vm0 = vcmask 130048   ;;  %s722_s0 = inlined_call_operand.vmem [shape: f32[128,16], index: 0, kind: input, shape index: {}]   ;;  %s723_s1 = inlined_call_operand.vmem [shape: f32[64,16], index: 1, kind: input, shape index: {}]   ;;  %s724_s2 = inlined_call_operand.vmem [shape: f32[64,1], index: 2, kind: input, shape index: {}]   ;;  %s725_s3 = inlined_call_operand.vmem [shape: f32[56,64], index: 3, kind: input, shape index: {}]   ;;  %s726_s4 = inlined_call_operand.vmem [shape: f32[56,1], index: 4, kind: input, shape index: {}]   ;;  %s727_s5 = inlined_call_operand.vmem [shape: f32[1,56], index: 5, kind: input, shape index: {}]   ;;  %s728_s6 = inlined_call_operand.<no memory space> [shape: f32[1,1], index: 6, kind: input, shape index: {}]   ;;  %s729_s7 = inlined_call_operand.hbm [shape: f32[1,128], index: 7, kind: output, shape index: {}]  }
   0x1   :  { %v51_v0 = vld [vmem:[%s722_s0 + $0x78] sm:$0xff]  ;;  %v50_v1 = vld [vmem:[%s722_s0 + $0x70] sm:$0xff] }
   0x2   :  { %415 = vmatpush.xpose.msk.msra.mxu3 %vm100_vm0, %v51_v0  ;;  %414 = vmatpush.xpose.msk.msra.mxu2 %vm100_vm0, %v51_v0 }
   0x3   :  { %382 = vmatpush.xpose.msk.msra.mxu0 %vm100_vm0, %v51_v0 }
   0x4   :  { %13 = vsyncpa [#allocation4], 0  ;;  %v49_v2 = vld [vmem:[%s722_s0 + $0x68] sm:$0xff]  ;;  %v48_v3 = vld [vmem:[%s722_s0 + $0x60] sm:$0xff]  ;;  %v477_v9 = vmov 0   ;;  %vm271_vm1 = vcmask 523264  }
   0x5   :  { %v47_v4 = vld [vmem:[%s722_s0 + $0x58] sm:$0xff]  ;;  %v46_v5 = vld [vmem:[%s722_s0 + $0x50] sm:$0xff]  ;;  %v45_v6 = vld [vmem:[%s722_s0 + $0x48] sm:$0xff]  ;;  %448 = vset.pattern.permute.xlu0 %v477_v9  ;;  %449 = vset.pattern.permute.xlu1 %v477_v9  ;;  %vm341_vm2 = vcmask 457728   ;;  %s478_s21 = smov [#allocation3]   ;;  %s373_s25 = sshll.u32 %s729_s7, 4  ;;  %s374_s25 = int_to_ptr.hbm [resolvable:$true] %s373_s25 }
   0x6   :  { %417 = vmatpush.xpose.msk.msra.mxu3 %vm100_vm0, %v50_v1  ;;  %416 = vmatpush.xpose.msk.msra.mxu2 %vm100_vm0, %v50_v1  ;;  %v59_v7 = vld [vmem:[%s724_s2 + $0x38] sm:$0xff]  ;;  %v44_v8 = vld [vmem:[%s722_s0 + $0x40] sm:$0xff]  ;;  %v57_v10 = vld [vmem:[%s724_s2 + $0x28] sm:$0xff]  ;;  %s371_s22 = sshll.u32 %s478_s21, 4  ;;  %s372_s22 = int_to_ptr.vmem [resolvable:$true] %s371_s22 }
   0x7   :  { %383 = vmatpush.xpose.msk.msra.mxu0 %vm100_vm0, %v50_v1  ;;  %97 = vperm.xlu0 %448, %v59_v7   ;;  %v43_v11 = vld [vmem:[%s722_s0 + $0x38] sm:$0xff]  ;;  %v58_v12 = vld [vmem:[%s724_s2 + $0x30] sm:$0xff]  ;;  %v56_v14 = vld [vmem:[%s724_s2 + $0x20] sm:$0xff] }
   0x8   :  { %450 = vset.pattern.permute.xlu2 %v477_v9  ;;  %87 = vperm.xlu1 %449, %v57_v10   ;;  %v42_v13 = vld [vmem:[%s722_s0 + $0x30] sm:$0xff]  ;;  %v41_v15 = vld [vmem:[%s722_s0 + $0x28] sm:$0xff]  ;;  %v40_v17 = vld [vmem:[%s722_s0 + $0x20] sm:$0xff] }
   0x9   :  { %v53_v16 = vld [vmem:[%s724_s2 + $0x8] sm:$0xff]  ;;  %v52_v18 = vld [vmem:[%s724_s2] sm:$0xff]  ;;  %v39_v19 = vld [vmem:[%s722_s0 + $0x18] sm:$0xff] }
   0xa   :  { %419 = vmatpush.xpose.msk.msra.mxu3 %vm100_vm0, %v49_v2  ;;  %418 = vmatpush.xpose.msk.msra.mxu2 %vm100_vm0, %v49_v2  ;;  %v234_v20 = vld [vmem:[%s726_s4 + $0x28] sm:$0xff]  ;;  %v55_v21 = vld [vmem:[%s724_s2 + $0x18] sm:$0xff]  ;;  %v38_v22 = vld [vmem:[%s722_s0 + $0x10] sm:$0xff] }
   0xb   :  { %384 = vmatpush.xpose.msk.msra.mxu0 %vm100_vm0, %v49_v2  ;;  %77 = vperm.xlu2 %450, %v55_v21   ;;  %v233_v23 = vld [vmem:[%s726_s4 + $0x20] sm:$0xff]  ;;  %v37_v24 = vld [vmem:[%s722_s0 + $0x8] sm:$0xff]  ;;  %v54_v25 = vld [vmem:[%s724_s2 + $0x10] sm:$0xff] }
   0xc   :  { %v231_v26 = vld [vmem:[%s726_s4 + $0x10] sm:$0xff]  ;;  %v36_v27 = vld [vmem:[%s722_s0] sm:$0xff]  ;;  %v230_v28 = vld [vmem:[%s726_s4 + $0x8] sm:$0xff] }
   0xd   :  { %v33_v29 = vld [vmem:[%s723_s1 + $0x28] sm:$0xff]  ;;  %v31_v30 = vld [vmem:[%s723_s1 + $0x18] sm:$0xff]  ;;  %v28_v31 = vld [vmem:[%s723_s1] sm:$0xff] }
   0xe   :  { %421 = vmatpush.xpose.msk.msra.mxu3 %vm100_vm0, %v48_v3  ;;  %420 = vmatpush.xpose.msk.msra.mxu2 %vm100_vm0, %v48_v3  ;;  %v235_v32 = vld [vmem:[%s726_s4 + $0x30] sm:$0xff]  ;;  %v32_v34 = vld [vmem:[%s723_s1 + $0x20] sm:$0xff]  ;;  %v29_v35 = vld [vmem:[%s723_s1 + $0x8] sm:$0xff] }
   0xf   :  { %385 = vmatpush.xpose.msk.msra.mxu0 %vm100_vm0, %v48_v3  ;;  %92 = vperm.xlu0 %448, %v58_v12   ;;  %v34_v33 = vld [vmem:[%s723_s1 + $0x30] sm:$0xff]  ;;  %v232_v36 = vld [vmem:[%s726_s4 + $0x18] sm:$0xff]  ;;  %v229_v39 = vld [vmem:[%s726_s4] sm:$0xff] }
  0x10   :  { %82 = vperm.xlu1 %449, %v56_v14   ;;  %v35_v37 = vld [vmem:[%s723_s1 + $0x38] sm:$0xff]  ;;  %v30_v38 = vld [vmem:[%s723_s1 + $0x10] sm:$0xff]  ;;  %v223_v9 = vld [vmem:[%s725_s3 + $0x8] sm:$0xff] }
  0x11   :  { %v224_v10 = vld [vmem:[%s725_s3 + $0x10] sm:$0xff]  ;;  %v226_v12 = vld [vmem:[%s725_s3 + $0x20] sm:$0xff] }
  0x12   :  { %423 = vmatpush.xpose.msk.msra.mxu3 %vm100_vm0, %v47_v4  ;;  %422 = vmatpush.xpose.msk.msra.mxu2 %vm100_vm0, %v47_v4  ;;  %v228_v14 = vld [vmem:[%s725_s3 + $0x30] sm:$0xff] }
  0x13   :  { %386 = vmatpush.xpose.msk.msra.mxu0 %vm100_vm0, %v47_v4  ;;  %72 = vperm.xlu2 %450, %v54_v25  }
  0x16   :  { %425 = vmatpush.xpose.msk.msra.mxu3 %vm100_vm0, %v46_v5  ;;  %424 = vmatpush.xpose.msk.msra.mxu2 %vm100_vm0, %v46_v5 }
  0x17   :  { %387 = vmatpush.xpose.msk.msra.mxu0 %vm100_vm0, %v46_v5  ;;  %67 = vperm.xlu0 %448, %v53_v16  }
  0x18   :  { %62 = vperm.xlu1 %449, %v52_v18  }
  0x1a   :  { %427 = vmatpush.xpose.msk.msra.mxu3 %vm100_vm0, %v45_v6  ;;  %426 = vmatpush.xpose.msk.msra.mxu2 %vm100_vm0, %v45_v6 }
  0x1b   :  { %388 = vmatpush.xpose.msk.msra.mxu0 %vm100_vm0, %v45_v6  ;;  %268 = vperm.xlu2 %450, %v235_v32  }
  0x1e   :  { %429 = vmatpush.xpose.msk.msra.mxu3 %vm100_vm0, %v44_v8  ;;  %428 = vmatpush.xpose.msk.msra.mxu2 %vm100_vm0, %v44_v8 }
  0x1f   :  { %389 = vmatpush.xpose.msk.msra.mxu0 %vm100_vm0, %v44_v8  ;;  %263 = vperm.xlu0 %448, %v234_v20   ;;  %v222_v8 = vld [vmem:[%s725_s3] sm:$0xff] }
  0x20   :  { %258 = vperm.xlu1 %449, %v233_v23  }
  0x22   :  { %431 = vmatpush.xpose.msk.msra.mxu3 %vm100_vm0, %v43_v11  ;;  %430 = vmatpush.xpose.msk.msra.mxu2 %vm100_vm0, %v43_v11 }
  0x23   :  { %390 = vmatpush.xpose.msk.msra.mxu0 %vm100_vm0, %v43_v11  ;;  %253 = vperm.xlu2 %450, %v232_v36   ;;  %v225_v11 = vld [vmem:[%s725_s3 + $0x18] sm:$0xff] }
  0x26   :  { %433 = vmatpush.xpose.msk.msra.mxu3 %vm100_vm0, %v42_v13  ;;  %432 = vmatpush.xpose.msk.msra.mxu2 %vm100_vm0, %v42_v13 }
  0x27   :  { %391 = vmatpush.xpose.msk.msra.mxu0 %vm100_vm0, %v42_v13  ;;  %248 = vperm.xlu0 %448, %v231_v26   ;;  %v227_v13 = vld [vmem:[%s725_s3 + $0x28] sm:$0xff] }
  0x28   :  { %243 = vperm.xlu1 %449, %v230_v28  }
  0x2a   :  { %435 = vmatpush.xpose.msk.msra.mxu3 %vm100_vm0, %v41_v15  ;;  %434 = vmatpush.xpose.msk.msra.mxu2 %vm100_vm0, %v41_v15 }
  0x2b   :  { %392 = vmatpush.xpose.msk.msra.mxu0 %vm100_vm0, %v41_v15  ;;  %238 = vperm.xlu2 %450, %v229_v39  }
  0x2e   :  { %437 = vmatpush.xpose.msk.msra.mxu3 %vm100_vm0, %v40_v17  ;;  %436 = vmatpush.xpose.msk.msra.mxu2 %vm100_vm0, %v40_v17 }
  0x2f   :  { %393 = vmatpush.xpose.msk.msra.mxu0 %vm100_vm0, %v40_v17 }
  0x32   :  { %439 = vmatpush.xpose.msk.msra.mxu3 %vm100_vm0, %v39_v19  ;;  %438 = vmatpush.xpose.msk.msra.mxu2 %vm100_vm0, %v39_v19 }
  0x33   :  { %394 = vmatpush.xpose.msk.msra.mxu0 %vm100_vm0, %v39_v19 }
  0x36   :  { %441 = vmatpush.xpose.msk.msra.mxu3 %vm100_vm0, %v38_v22  ;;  %440 = vmatpush.xpose.msk.msra.mxu2 %vm100_vm0, %v38_v22 }
  0x37   :  { %395 = vmatpush.xpose.msk.msra.mxu0 %vm100_vm0, %v38_v22 }
  0x3a   :  { %443 = vmatpush.xpose.msk.msra.mxu3 %vm100_vm0, %v37_v24  ;;  %442 = vmatpush.xpose.msk.msra.mxu2 %vm100_vm0, %v37_v24 }
  0x3b   :  { %396 = vmatpush.xpose.msk.msra.mxu0 %vm100_vm0, %v37_v24 }
  0x3e   :  { %445 = vmatpush.xpose.msk.msra.mxu3 %vm100_vm0, %v36_v27  ;;  %444 = vmatpush.xpose.msk.msra.mxu2 %vm100_vm0, %v36_v27 }
  0x3f   :  { %397 = vmatpush.xpose.msk.msra.mxu0 %vm100_vm0, %v36_v27 }
  0x41   :  { %403 = vmatmul.msk.f32.vlgmr.msra.gmra.mxu3 %vm100_vm0, %v33_v29  ;;  %401 = vmatmul.msk.f32.vlgmr.msra.gmra.mxu2 %vm100_vm0, %v31_v30 }
  0x42   :  { %398 = vmatmul.msk.f32.vlgmr.msra.gmra.mxu0 %vm100_vm0, %v28_v31 }
  0x49   :  { %404 = vmatmul.msk.f32.gmra.mxu3 %vm100_vm0, %v34_v33  ;;  %402 = vmatmul.msk.f32.gmra.mxu2 %vm100_vm0, %v32_v34 }
  0x4a   :  { %399 = vmatmul.msk.f32.gmra.mxu0 %vm100_vm0, %v29_v35 }
  0x51   :  { %405 = vmatmul.msk.f32.gmra.mxu3 %vm100_vm0, %v35_v37 }
  0x52   :  { %400 = vmatmul.msk.f32.gmra.mxu0 %vm100_vm0, %v30_v38 }
  0x65   :  { %v78_v47 = vpop.permute.xlu2 %77 }
  0x6d   :  { %v73_v61 = vpop.permute.xlu2 %72 }
  0x75   :  { %v269_v20 = vpop.permute.xlu2 %268 }
  0x79   :  { %v98_v42 = vpop.permute.xlu0 %97 }
  0x7a   :  { %v88_v43 = vpop.permute.xlu1 %87 }
  0x7d   :  { %v254_v24 = vpop.permute.xlu2 %253 }
  0x81   :  { %v93_v48 = vpop.permute.xlu0 %92 }
  0x82   :  { %v83_v52 = vpop.permute.xlu1 %82 }
  0x85   :  { %v239_v38 = vpop.permute.xlu2 %238 }
  0x89   :  { %v68_v0 = vpop.permute.xlu0 %67 }
  0x8a   :  { %v63_v3 = vpop.permute.xlu1 %62 }
  0x91   :  { %v264_v22 = vpop.permute.xlu0 %263 }
  0x92   :  { %v259_v23 = vpop.permute.xlu1 %258 }
  0x99   :  { %v249_v32 = vpop.permute.xlu0 %248 }
  0x9a   :  { %v244_v35 = vpop.permute.xlu1 %243 }
  0xbf   :  { %v190_v41 = vpop.f32.mrf.mxu0 }
  0xc0   :  { %v191_v4 = vadd.f32 %v190_v41, %v63_v3 }
  0xc2   :  { %v214_v7 = vmax.f32 %v191_v4, 0.0 }
  0xc4   :  { %v205_v40 = vpop.f32.mrf.mxu3  ;;  %v199_v44 = vpop.f32.mrf.mxu2 }
  0xc5   :  { %v206_v54 = vadd.f32 %v205_v40, %v88_v43  ;;  %v200_v60 = vadd.f32 %v199_v44, %v78_v47  ;;  %v338_v43 = vld [vmem:[%s727_s5] sm:$0x1]  ;;  %v340_v44 = vstv %s728_s6 }
  0xc7   :  { %v193_v46 = vpop.f32.mrf.mxu0  ;;  %v219_v59 = vmax.f32 %v206_v54, 0.0  ;;  %v217_v1 = vmax.f32 %v200_v60, 0.0 }
  0xc8   :  { %v194_v2 = vadd.f32 %v193_v46, %v68_v0 }
  0xca   :  { %v215_v6 = vmax.f32 %v194_v2, 0.0 }
  0xcc   :  { %v208_v45 = vpop.f32.mrf.mxu3  ;;  %v202_v53 = vpop.f32.mrf.mxu2 }
  0xcd   :  { %v209_v50 = vadd.f32 %v208_v45, %v93_v48  ;;  %v203_v57 = vadd.f32 %v202_v53, %v83_v52 }
  0xcf   :  { %v220_v56 = vmax.f32 %v209_v50, 0.0  ;;  %v196_v58 = vpop.f32.mrf.mxu0  ;;  %v218_v62 = vmax.f32 %v203_v57, 0.0 }
  0xd0   :  { %v197_v63 = vadd.f32 %v196_v58, %v73_v61 }
  0xd2   :  { %v216_v5 = vmax.f32 %v197_v63, 0.0 }
  0xd4   :  { %v211_v49 = vpop.f32.mrf.mxu3 }
  0xd5   :  { %v212_v51 = vadd.f32 %v211_v49, %v98_v42 }
  0xd7   :  { %v221_v55 = vmax.f32 %v212_v51, 0.0 }
  0xd9   :  { %301 = vmatpush.msra.mxu1 %v221_v55 }
  0xdb   :  { %302 = vmatpush.msra.mxu1 %v220_v56 }
  0xdd   :  { %303 = vmatpush.msra.mxu1 %v219_v59 }
  0xdf   :  { %304 = vmatpush.msra.mxu1 %v218_v62 }
  0xe1   :  { %305 = vmatpush.msra.mxu1 %v217_v1 }
  0xe3   :  { %306 = vmatpush.msra.mxu1 %v216_v5 }
  0xe5   :  { %307 = vmatpush.msra.mxu1 %v215_v6 }
  0xe7   :  { %308 = vmatpush.msra.mxu1 %v214_v7 }
  0xe8   :  { %406 = vmatmul.msk.f32.vlgmr.msra.gmra.mxu1 %vm271_vm1, %v222_v8 }
  0xf0   :  { %407 = vmatmul.msk.f32.gmra.mxu1 %vm271_vm1, %v223_v9 }
  0xf8   :  { %408 = vmatmul.msk.f32.gmra.mxu1 %vm271_vm1, %v224_v10 }
 0x100   :  { %409 = vmatmul.msk.f32.gmra.mxu1 %vm271_vm1, %v225_v11 }
 0x108   :  { %410 = vmatmul.msk.f32.gmra.mxu1 %vm271_vm1, %v226_v12 }
 0x110   :  { %411 = vmatmul.msk.f32.gmra.mxu1 %vm271_vm1, %v227_v13 }
 0x118   :  { %412 = vmatmul.msk.f32.gmra.mxu1 %vm271_vm1, %v228_v14 }
 0x165   :  { %v310_v15 = vpop.f32.mrf.mxu1 }
 0x166   :  { %v311_v39 = vadd.f32 %v310_v15, %v239_v38 }
 0x168   :  { %v331_v42 = vmax.f32 %v311_v39, 0.0 }
 0x16d   :  { %v313_v16 = vpop.f32.mrf.mxu1 }
 0x16e   :  { %v314_v36 = vadd.f32 %v313_v16, %v244_v35 }
 0x170   :  { %v332_v41 = vmax.f32 %v314_v36, 0.0 }
 0x175   :  { %v316_v17 = vpop.f32.mrf.mxu1 }
 0x176   :  { %v317_v33 = vadd.f32 %v316_v17, %v249_v32 }
 0x178   :  { %v333_v40 = vmax.f32 %v317_v33, 0.0 }
 0x17d   :  { %v319_v18 = vpop.f32.mrf.mxu1 }
 0x17e   :  { %v320_v30 = vadd.f32 %v319_v18, %v254_v24 }
 0x180   :  { %v334_v37 = vmax.f32 %v320_v30, 0.0 }
 0x185   :  { %v322_v19 = vpop.f32.mrf.mxu1 }
 0x186   :  { %v323_v28 = vadd.f32 %v322_v19, %v259_v23 }
 0x188   :  { %v335_v34 = vmax.f32 %v323_v28, 0.0 }
 0x18d   :  { %v325_v21 = vpop.f32.mrf.mxu1 }
 0x18e   :  { %v326_v26 = vadd.f32 %v325_v21, %v264_v22 }
 0x190   :  { %v336_v31 = vmax.f32 %v326_v26, 0.0 }
 0x195   :  { %v328_v25 = vpop.f32.mrf.mxu1 }
 0x196   :  { %v329_v27 = vadd.f32 %v328_v25, %v269_v20 }
 0x198   :  { %v337_v29 = vmax.f32 %v329_v27, 0.0 }
 0x19a   :  { %354 = vmatpush.msrb.mxu2 %v337_v29 }
 0x19c   :  { %355 = vmatpush.msrb.mxu2 %v336_v31 }
 0x19e   :  { %356 = vmatpush.msrb.mxu2 %v335_v34 }
 0x1a0   :  { %357 = vmatpush.msrb.mxu2 %v334_v37 }
 0x1a2   :  { %358 = vmatpush.msrb.mxu2 %v333_v40 }
 0x1a4   :  { %359 = vmatpush.msrb.mxu2 %v332_v41 }
 0x1a6   :  { %360 = vmatpush.msrb.mxu2 %v331_v42 }
 0x1a7   :  { %413 = vmatmul.msk.f32.vlgmr.msrb.gmra.mxu2 %vm341_vm2, %v338_v43 }
 0x22a   :  { %v362_v45 = vpop.f32.mrf.mxu2 }
 0x22b   :  { %v363_v46 = vadd.f32 %v362_v45, %v340_v44 }
 0x22d   :  { %365 = vst [vmem:[#allocation3] sm:$0x1] %v363_v46 }
 0x22e   :  { %376 = dma.vmem_to_hbm [thread:$0]  %s372_s22, 16, %s374_s25, [#allocation4]  }
 0x22f   :  { %475 = dma.done.wait [#allocation4], 16  }
 0x230   :  { %476 = vsyncadd [#allocation4], 4294967280 }
 0x231   :  { %381 = vsyncpa [#allocation4], 1 }

</bundles_post_ra>
